<compile_context>
chip_gen: v6e
topology: v6e:2x2x1
jax: 0.10.0
libtpu: 0.0.40
codegen_flags: <defaults>
</compile_context>

<pallas_src>
import math

import jax
import jax.numpy as jnp
from jax.experimental import pallas as pl
from jax.experimental.pallas import tpu as pltpu

EXPANSION = 4
BN_EPS = 1e-5


# ------------------------------------------------------------------ utilities
def _round_up(x, m):
    return (x + m - 1) // m * m


def _choose_k_tiling(K):
    """Pick padded K (Kp) and K-tile (TK); both multiples of 128."""
    Kp = _round_up(K, 128)
    if Kp <= 512:
        return Kp, Kp                       # single K step
    for TK in (512, 256):                   # prefer wide K tiles; allow <=128 extra zero pad
        Kq = _round_up(K, TK)
        if Kq - Kp <= 128:
            return Kq, TK
    return Kp, 128


# ------------------------------------------------------- Pallas matmul kernel
def _make_conv_kernel(has_residual, relu):
    """out = [relu]( patches @ W_bnfolded + bias [+ residual] ).

    bf16 operands on the MXU, f32 scratch accumulator, bf16 output written
    only on the final K step (output block is resident across K).
    """

    def kernel(*refs):
        if has_residual:
            p_ref, w_ref, b_ref, r_ref, o_ref, acc_ref = refs
        else:
            p_ref, w_ref, b_ref, o_ref, acc_ref = refs
            r_ref = None

        k = pl.program_id(2)

        @pl.when(k == 0)
        def _():
            acc_ref[...] = jnp.zeros_like(acc_ref)

        acc_ref[...] += jnp.dot(p_ref[...], w_ref[...],
                                preferred_element_type=jnp.float32)

        @pl.when(k == pl.num_programs(2) - 1)
        def _():
            y = acc_ref[...] + b_ref[...]
            if r_ref is not None:
                y = y + r_ref[...].astype(jnp.float32)
            if relu:
                y = jnp.maximum(y, 0.0)
            o_ref[...] = y.astype(o_ref.dtype)

    return kernel


def fused_conv_matmul(patches, cp, M, residual=None, relu=True):
    """patches: (M, K) bf16.  cp holds pre-padded bf16 weight (Kp, Np) and f32 bias (1, Np)."""
    w_pad, bias_pad = cp["w"], cp["b"]
    K, Cout, TK = cp["K"], cp["Cout"], cp["TK"]
    Kp, Np = w_pad.shape

    # N tile: 256 on wide layers (full 256-wide MXU on v6e/v7x, still >=2 blocks
    # for the two v7x TensorCores), 128 otherwise (matches v5e MXU width).
    TN = 256 if (Np >= 512 and Np % 256 == 0) else 128

    # M tile: multiples of 16 (bf16 sublane packing); cap at 256 for big slabs.
    Mp = _round_up(max(M, 16), 16)
    if Mp > 512:
        Mp = _round_up(M, 256)
        tm = 256
    else:
        tm = Mp

    p = jnp.pad(patches, ((0, Mp - M), (0, Kp - K)))

    args = [p, w_pad, bias_pad]
    in_specs = [
        pl.BlockSpec((tm, TK), lambda i, j, k: (i, k)),
        pl.BlockSpec((TK, TN), lambda i, j, k: (k, j)),
        pl.BlockSpec((1, TN), lambda i, j, k: (0, j)),
    ]
    has_res = residual is not None
    if has_res:
        r = jnp.pad(residual, ((0, Mp - M), (0, Np - Cout)))
        args.append(r)
        in_specs.append(pl.BlockSpec((tm, TN), lambda i, j, k: (i, j)))

    grid = (Mp // tm, Np // TN, Kp // TK)

    out = pl.pallas_call(
        _make_conv_kernel(has_res, relu),
        out_shape=jax.ShapeDtypeStruct((Mp, Np), jnp.bfloat16),
        grid_spec=pltpu.PrefetchScalarGridSpec(
            num_scalar_prefetch=0,
            grid=grid,
            in_specs=in_specs,
            out_specs=pl.BlockSpec((tm, TN), lambda i, j, k: (i, j)),
            scratch_shapes=[pltpu.VMEM((tm, TN), jnp.float32)],
        ),
        compiler_params=pltpu.CompilerParams(
            dimension_semantics=("parallel", "parallel", "arbitrary")
        ),
    )(*args)
    return out[:M, :Cout]


# ------------------------------------------------------------- conv glue (NHWC)
def _im2col_nhwc(x, kh, kw, stride, padding, dilation):
    """x: (N, H, W, C) -> patches (N*Ho*Wo, kh*kw*C), column order (kh, kw, Cin)."""
    N, H, W, C = x.shape
    if padding > 0:
        x = jnp.pad(x, ((0, 0), (padding, padding), (padding, padding), (0, 0)))
    Hp, Wp = H + 2 * padding, W + 2 * padding
    Ho = (Hp - dilation * (kh - 1) - 1) // stride + 1
    Wo = (Wp - dilation * (kw - 1) - 1) // stride + 1
    cols = []
    for i in range(kh):
        for j in range(kw):
            hi, wj = i * dilation, j * dilation
            cols.append(
                jax.lax.slice(
                    x,
                    (0, hi, wj, 0),
                    (N, hi + (Ho - 1) * stride + 1, wj + (Wo - 1) * stride + 1, C),
                    (1, stride, stride, 1),
                )
            )
    patches = jnp.stack(cols, axis=3)                       # (N, Ho, Wo, kh*kw, C)
    patches = patches.reshape(N * Ho * Wo, kh * kw * C)
    return patches, Ho, Wo


def conv2d_fused(x, cp, stride=1, padding=0, dilation=1, relu=True, residual=None):
    """x: NHWC bf16.  cp: pre-folded conv params.  Returns NHWC bf16."""
    N, H, W, Cin = x.shape
    kh, kw = cp["kh"], cp["kw"]
    if kh == 1 and kw == 1 and stride == 1 and padding == 0:
        patches, Ho, Wo = x.reshape(N * H * W, Cin), H, W
    else:
        patches, Ho, Wo = _im2col_nhwc(x, kh, kw, stride, padding, dilation)
    M = N * Ho * Wo
    res_flat = None
    if residual is not None:
        res_flat = residual.reshape(M, cp["Cout"])           # NHWC: no transpose needed
    out = fused_conv_matmul(patches, cp, M, res_flat, relu)
    return out.reshape(N, Ho, Wo, cp["Cout"])


# -------------------------------------------------------------- maxpool kernel
def _maxpool_kernel(x_ref, o_ref):
    o_ref[...] = jnp.max(x_ref[...], axis=0)


def maxpool_3x3_s2_p1(x):
    """x: NHWC bf16.  3x3 max pool, stride 2, padding 1 (channels on lanes)."""
    N, H, W, C = x.shape
    pad = 1
    xp = jnp.pad(x, ((0, 0), (pad, pad), (pad, pad), (0, 0)),
                 constant_values=-jnp.inf)
    Ho = (H + 2 * pad - 3) // 2 + 1
    Wo = (W + 2 * pad - 3) // 2 + 1
    wins = []
    for i in range(3):
        for j in range(3):
            wins.append(
                jax.lax.slice(
                    xp,
                    (0, i, j, 0),
                    (N, i + (Ho - 1) * 2 + 1, j + (Wo - 1) * 2 + 1, C),
                    (1, 2, 2, 1),
                )
            )
    M = N * Ho * Wo
    stacked = jnp.stack(wins, 0).reshape(9, M, C)
    if M <= 512:
        Mp = _round_up(max(M, 16), 16)
        TR = Mp
    else:
        Mp = _round_up(M, 256)
        TR = 256
    if Mp != M:
        stacked = jnp.pad(stacked, ((0, 0), (0, Mp - M), (0, 0)),
                          constant_values=-jnp.inf)
    out = pl.pallas_call(
        _maxpool_kernel,
        out_shape=jax.ShapeDtypeStruct((Mp, C), x.dtype),
        grid_spec=pltpu.PrefetchScalarGridSpec(
            num_scalar_prefetch=0,
            grid=(Mp // TR,),
            in_specs=[pl.BlockSpec((9, TR, C), lambda i: (0, i, 0))],
            out_specs=pl.BlockSpec((TR, C), lambda i: (i, 0)),
        ),
        compiler_params=pltpu.CompilerParams(dimension_semantics=("parallel",)),
    )(stacked)
    return out[:M].reshape(N, Ho, Wo, C)


# ---------------------------------------------------------------- param init
def _init_bn(c):
    # PyTorch init: weight=1, bias=0; running stats default mean=0, var=1 (eval mode).
    return (jnp.ones((c,), jnp.float32), jnp.zeros((c,), jnp.float32),
            jnp.zeros((c,), jnp.float32), jnp.ones((c,), jnp.float32))


def _make_conv_params(key, cout, cin, kh, kw):
    """Conv weight (PyTorch init) with BN folded, pre-transposed/padded, bf16."""
    n = kh * kw * cout
    std = math.sqrt(2.0 / n)
    w = jax.random.normal(key, (cout, cin, kh, kw), jnp.float32) * std
    gamma, beta, mean, var = _init_bn(cout)
    scale = gamma / jnp.sqrt(var + BN_EPS)
    bias = beta - mean * scale
    K = cin * kh * kw
    # fold BN scale into the weight; column order (kh, kw, Cin) matches im2col
    wt = (w * scale[:, None, None, None]).transpose(2, 3, 1, 0).reshape(K, cout)
    Kp, TK = _choose_k_tiling(K)
    Np = _round_up(cout, 128)
    w_pad = jnp.zeros((Kp, Np), jnp.bfloat16).at[:K, :cout].set(wt.astype(jnp.bfloat16))
    b_pad = jnp.zeros((1, Np), jnp.float32).at[0, :cout].set(bias)
    return dict(w=w_pad, b=b_pad, K=K, Cout=cout, kh=kh, kw=kw, TK=TK)


def _init_bottleneck(key, inplanes, planes, stride, dilation, downsample_spec):
    keys = jax.random.split(key, 4)
    p = {}
    p["conv1"] = _make_conv_params(keys[0], planes, inplanes, 1, 1)
    # siamban Bottleneck conv2 padding / dilation rules
    padding = 2 - stride
    dil = dilation
    if downsample_spec is not None and dilation > 1:
        dil = dilation // 2
        padding = dil
    if dil > 1:
        padding = dil
    assert stride == 1 or dil == 1
    p["conv2"] = _make_conv_params(keys[1], planes, planes, 3, 3)
    p["conv2_cfg"] = dict(stride=stride, padding=padding, dilation=dil)
    p["conv3"] = _make_conv_params(keys[2], planes * EXPANSION, planes, 1, 1)
    if downsample_spec is not None:
        k = downsample_spec["kernel"]
        p["ds_conv"] = _make_conv_params(keys[3], planes * EXPANSION, inplanes, k, k)
        p["ds_cfg"] = downsample_spec
    return p


def _make_layer_params(key, inplanes, planes, blocks, stride=1, dilation=1):
    downsample_spec = None
    if stride != 1 or inplanes != planes * EXPANSION:
        if stride == 1 and dilation == 1:
            downsample_spec = dict(kernel=1, stride=stride, padding=0, dilation=1)
        else:
            if dilation > 1:
                dd = dilation // 2
                padding = dd
            else:
                dd = 1
                padding = 0
            downsample_spec = dict(kernel=3, stride=stride, padding=padding, dilation=dd)
    keys = jax.random.split(key, max(blocks, 1))
    layer = [_init_bottleneck(keys[0], inplanes, planes, stride, dilation, downsample_spec)]
    inplanes = planes * EXPANSION
    for i in range(1, blocks):
        layer.append(_init_bottleneck(keys[i], inplanes, planes, 1, dilation, None))
    return layer, inplanes


def init_shufflenet(key, layers, used_layers):
    keys = jax.random.split(key, 8)
    params = {"used_layers": used_layers}
    inplanes = 64
    params["conv1"] = _make_conv_params(keys[0], 64, 3, 7, 7)
    params["layer1"], inplanes = _make_layer_params(keys[1], inplanes, 64, layers[0])
    params["layer2"], inplanes = _make_layer_params(keys[2], inplanes, 128, layers[1], stride=2)
    use3 = (3 in used_layers) or (4 in used_layers)
    use4 = 4 in used_layers
    if use3:
        params["layer3"], inplanes = _make_layer_params(
            keys[3], inplanes, 256, layers[2], stride=1, dilation=2)
    else:
        params["layer3"] = None
    if use4:
        params["layer4"], inplanes = _make_layer_params(
            keys[4], inplanes, 512, layers[3], stride=1, dilation=4)
    else:
        params["layer4"] = None
    return params


# ------------------------------------------------------------------- forward
def _run_block(bp, x):
    out = conv2d_fused(x, bp["conv1"], relu=True)
    cfg = bp["conv2_cfg"]
    out = conv2d_fused(out, bp["conv2"], stride=cfg["stride"],
                       padding=cfg["padding"], dilation=cfg["dilation"], relu=True)
    if "ds_conv" in bp:
        ds = bp["ds_cfg"]
        residual = conv2d_fused(x, bp["ds_conv"], stride=ds["stride"],
                                padding=ds["padding"], dilation=ds["dilation"], relu=False)
    else:
        residual = x
    # conv3 + folded BN + residual add + relu, fused in the Pallas epilogue
    out = conv2d_fused(out, bp["conv3"], relu=True, residual=residual)
    return out


def _run_layer(layer_params, x):
    if layer_params is None:
        return x
    for bp in layer_params:
        x = _run_block(bp, x)
    return x


def shufflenet_forward(params, x):
    # external interface is NCHW f32 (like the PyTorch module); internally NHWC bf16
    x = x.transpose(0, 2, 3, 1).astype(jnp.bfloat16)
    x_ = conv2d_fused(x, params["conv1"], stride=2, padding=0, relu=True)
    x = maxpool_3x3_s2_p1(x_)
    p1 = _run_layer(params["layer1"], x)
    p2 = _run_layer(params["layer2"], p1)
    p3 = _run_layer(params["layer3"], p2)
    p4 = _run_layer(params["layer4"], p3)
    out = [x_, p1, p2, p3, p4]
    out = [out[i].transpose(0, 3, 1, 2).astype(jnp.float32)
           for i in params["used_layers"]]
    if len(out) == 1:
        return out[0]
    return out


# ---------------------------------------------------------------------- main
if __name__ == "__main__":
    key = jax.random.PRNGKey(0)
    k_param, k_in = jax.random.split(key)

    # block=Bottleneck (expansion=4), small layer counts for a quick test,
    # used_layers=[2, 3, 4] as in the reference usage.
    layers = [1, 1, 1, 1]
    used_layers = [2, 3, 4]
    params = init_shufflenet(k_param, layers, used_layers)

    # Small input consistent with the module: NCHW, 3 input channels.
    x = jax.random.normal(k_in, (2, 3, 31, 31), jnp.float32)

    outs = shufflenet_forward(params, x)
    outs = jax.block_until_ready(outs)

    # sanity: expected shapes for this configuration
    assert outs[0].shape == (2, 512, 3, 3)
    assert outs[1].shape == (2, 1024, 3, 3)
    assert outs[2].shape == (2, 2048, 3, 3)
    assert all(bool(jnp.all(jnp.isfinite(o))) for o in outs)

    print("KERNEL_OK")
</pallas_src>

<mosaic_0001>
module attributes {stable_mosaic.version = 11 : i64} {
  func.func @kernel(%arg0: i32, %arg1: i32, %arg2: i32, %arg3: memref<352x256xbf16, #tpu.memory_space<vmem>>, %arg4: memref<256x128xbf16, #tpu.memory_space<vmem>>, %arg5: memref<1x128xf32, #tpu.memory_space<vmem>>, %arg6: memref<352x128xbf16, #tpu.memory_space<vmem>>, %arg7: memref<352x128xf32, #tpu.memory_space<vmem>>) attributes {dimension_semantics = [#tpu.dimension_semantics<parallel>, #tpu.dimension_semantics<parallel>, #tpu.dimension_semantics<arbitrary>], iteration_bounds = array<i64: 1, 1, 1>, scalar_prefetch = 0 : i64, scratch_operands = 1 : i64, tpu.core_type = #tpu.core_type<tc>, window_params = [{transform_indices = @transform_0, window_bounds = array<i64: 352, 256>}, {transform_indices = @transform_1, window_bounds = array<i64: 256, 128>}, {transform_indices = @transform_2, window_bounds = array<i64: 1, 128>}, {transform_indices = @transform_3, window_bounds = array<i64: 352, 128>}]} {
    %c0_i32 = arith.constant 0 : i32
    %0 = arith.cmpi eq, %arg2, %c0_i32 : i32
    %1 = arith.extui %0 : i1 to i32
    %c0_i32_0 = arith.constant 0 : i32
    %2 = arith.cmpi ne, %1, %c0_i32_0 : i32
    scf.if %2 {
      %cst_10 = arith.constant 0.000000e+00 : f32
      %12 = vector.broadcast %cst_10 : f32 to vector<352x128xf32>
      %c0_11 = arith.constant 0 : index
      %c0_12 = arith.constant 0 : index
      %13 = vector.load %arg7[%c0_11, %c0_12] : memref<352x128xf32, #tpu.memory_space<vmem>>, vector<352x128xf32>
      tpu.vector_store %arg7[%c0_11, %c0_12], %12 {strides = array<i32>} : memref<352x128xf32, #tpu.memory_space<vmem>>, vector<352x128xf32>,
    } else {
    }
    %c0 = arith.constant 0 : index
    %c0_1 = arith.constant 0 : index
    %3 = vector.load %arg7[%c0, %c0_1] : memref<352x128xf32, #tpu.memory_space<vmem>>, vector<352x128xf32>
    %c0_2 = arith.constant 0 : index
    %c0_3 = arith.constant 0 : index
    %4 = vector.load %arg3[%c0_2, %c0_3] : memref<352x256xbf16, #tpu.memory_space<vmem>>, vector<352x256xbf16>
    %c0_4 = arith.constant 0 : index
    %c0_5 = arith.constant 0 : index
    %5 = vector.load %arg4[%c0_4, %c0_5] : memref<256x128xbf16, #tpu.memory_space<vmem>>, vector<256x128xbf16>
    %cst = arith.constant dense<0.000000e+00> : vector<352x128xf32>
    %6 = tpu.matmul %4, %5, %cst {dimension_numbers = #tpu.dot_dimension_numbers<[1], [0], [0], [1], [0, 0, 1, 1], [], []>} : vector<352x256xbf16>, vector<256x128xbf16>, vector<352x128xf32> -> vector<352x128xf32>
    %7 = arith.addf %3, %6 : vector<352x128xf32>
    %c0_6 = arith.constant 0 : index
    %c0_7 = arith.constant 0 : index
    %8 = vector.load %arg7[%c0_6, %c0_7] : memref<352x128xf32, #tpu.memory_space<vmem>>, vector<352x128xf32>
    tpu.vector_store %arg7[%c0_6, %c0_7], %7 {strides = array<i32>} : memref<352x128xf32, #tpu.memory_space<vmem>>, vector<352x128xf32>,
    %c0_i32_8 = arith.constant 0 : i32
    %9 = arith.cmpi eq, %arg2, %c0_i32_8 : i32
    %10 = arith.extui %9 : i1 to i32
    %c0_i32_9 = arith.constant 0 : i32
    %11 = arith.cmpi ne, %10, %c0_i32_9 : i32
    scf.if %11 {
      %c0_10 = arith.constant 0 : index
      %c0_11 = arith.constant 0 : index
      %12 = vector.load %arg7[%c0_10, %c0_11] : memref<352x128xf32, #tpu.memory_space<vmem>>, vector<352x128xf32>
      %c0_12 = arith.constant 0 : index
      %c0_13 = arith.constant 0 : index
      %13 = vector.load %arg5[%c0_12, %c0_13] : memref<1x128xf32, #tpu.memory_space<vmem>>, vector<1x128xf32>
      %14 = vector.broadcast %13 : vector<1x128xf32> to vector<352x128xf32>
      %15 = arith.addf %12, %14 : vector<352x128xf32>
      %cst_14 = arith.constant 0.000000e+00 : f32
      %16 = vector.broadcast %cst_14 : f32 to vector<352x128xf32>
      %17 = arith.maximumf %15, %16 : vector<352x128xf32>
      %18 = arith.truncf %17 : vector<352x128xf32> to vector<352x128xbf16>
      %c0_15 = arith.constant 0 : index
      %c0_16 = arith.constant 0 : index
      %19 = vector.load %arg6[%c0_15, %c0_16] : memref<352x128xbf16, #tpu.memory_space<vmem>>, vector<352x128xbf16>
      tpu.vector_store %arg6[%c0_15, %c0_16], %18 {strides = array<i32>} : memref<352x128xbf16, #tpu.memory_space<vmem>>, vector<352x128xbf16>,
    } else {
    }
    return
  }
  func.func @transform_0(%arg0: i32, %arg1: i32, %arg2: i32) -> (i32, i32) {
    %c0_i32 = arith.constant 0 : i32
    return %arg0, %arg2 : i32, i32
  }
  func.func @transform_1(%arg0: i32, %arg1: i32, %arg2: i32) -> (i32, i32) {
    %c0_i32 = arith.constant 0 : i32
    return %arg2, %arg1 : i32, i32
  }
  func.func @transform_2(%arg0: i32, %arg1: i32, %arg2: i32) -> (i32, i32) {
    %c0_i32 = arith.constant 0 : i32
    %c0_i32_0 = arith.constant 0 : i32
    return %c0_i32, %arg1 : i32, i32
  }
  func.func @transform_3(%arg0: i32, %arg1: i32, %arg2: i32) -> (i32, i32) {
    %c0_i32 = arith.constant 0 : i32
    return %arg0, %arg1 : i32, i32
  }
}

</mosaic_0001>

<bundles_post_ra>
// kernel: tpu_custom_call.1
= control target key start
LH: loop header
LB: loop body
LE: loop exit
PB: predicated region body
PF: predicated region fallthrough
CT: control target
= control target key end

     0   :  { %8 = vsyncpa [#allocation4], 0  ;;  %s1797_s0 = inlined_call_operand.hbm [shape: bf16[352,256], index: 0, kind: input, shape index: {}]   ;;  %s1798_s1 = inlined_call_operand.hbm [shape: bf16[256,128], index: 1, kind: input, shape index: {}]   ;;  %s1799_s2 = inlined_call_operand.vmem [shape: f32[1,128], index: 2, kind: input, shape index: {}]   ;;  %s1800_s3 = inlined_call_operand.hbm [shape: bf16[352,128], index: 3, kind: output, shape index: {}]  }
   0x1   :  { %9 = vsyncpa [#allocation7], 0 }
   0x2   :  { %10 = vsyncpa [#allocation5], 0  ;;  %s1673_s12 = smov [#allocation3]  }
   0x3   :  { %s16_s13 = sshll.u32 %s1673_s12, 4  ;;  %s17_s13 = int_to_ptr.vmem [resolvable:$true] %s16_s13 }
   0x4   :  { %s1615_s14 = scalar_lea.vmem %s17_s13, 5632  ;;  %p1620_p1 = scmp.lt.s32.totalorder %s17_s13, %s17_s13 }
   0x5   :  { %p1616_p0 = scmp.ne.s32.totalorder %s17_s13, %s1615_s14  ;;  %p1621_p2 = scmp.lt.s32.totalorder %s1615_s14, %s1615_s14 }
   0x7   :  { %p1622_p3 = por %p1621_p2, %p1620_p1 }
   0x9   :  { %p1623_p4 = pnand %p1622_p3, %p1616_p0 }
   0xb   :  { %1626 = shalt.err (!%p1623_p4)
}
   0xc   :  { %s1674_s15 = smov 128   ;;  %s1675_s16 = smov 8  }
   0xd   :  { %22 = dma.hbm_to_vmem [thread:$0]  %s1797_s0, 5632, %s17_s13, [#allocation4], %s1674_s15, %s1674_s15, %s1675_s16  }
   0xe   :  { %s1676_s19 = smov [#allocation6]  }
   0xf   :  { %s28_s20 = sshll.u32 %s1676_s19, 4  ;;  %s29_s20 = int_to_ptr.vmem [resolvable:$true] %s28_s20 }
  0x10   :  { %s1635_s21 = scalar_lea.vmem %s29_s20, 2048  ;;  %p1640_p6 = scmp.lt.s32.totalorder %s29_s20, %s29_s20 }
  0x11   :  { %p1636_p5 = scmp.ne.s32.totalorder %s29_s20, %s1635_s21  ;;  %p1641_p7 = scmp.lt.s32.totalorder %s1635_s21, %s1635_s21 }
  0x13   :  { %p1642_p8 = por %p1641_p7, %p1640_p6 }
  0x15   :  { %p1643_p9 = pnand %p1642_p8, %p1636_p5 }
  0x17   :  { %1646 = shalt.err (!%p1643_p9)
}
  0x18   :  { %s1677_s22 = smov 64   ;;  %s1678_s23 = smov 4  }
  0x19   :  { %34 = dma.hbm_to_vmem [thread:$0]  %s1798_s1, 2048, %s29_s20, [#allocation7], %s1677_s22, %s1677_s22, %s1678_s23  }
  0x1a   :  { %1667 = dma.done.wait [#allocation4], 5632  }
  0x1b   :  { %1668 = vsyncadd [#allocation4], 4294961664 }
  0x1c   :  { %1669 = dma.done.wait [#allocation7], 2048  }
  0x1d   :  { %1670 = vsyncadd [#allocation7], 4294965248  ;;  %v1679_v0 = vmov 0   ;;  %v1525_v1 = vld [vmem:[#allocation6 + $0x38] sm:$0xff]   ;;  %v1526_v2 = vld [vmem:[#allocation6 + $0x30] sm:$0xff]  }
  0x1e   :  { %528 = vmatprep.subr.bf16.mxu0 %v1679_v0  ;;  %1485 = vmatprep.subr.bf16.mxu1 %v1679_v0  ;;  %v1527_v3 = vld [vmem:[#allocation6 + $0x28] sm:$0xff]   ;;  %v1528_v4 = vld [vmem:[#allocation6 + $0x20] sm:$0xff]   ;;  %v1529_v5 = vld [vmem:[#allocation6 + $0x18] sm:$0xff]  }
  0x1f   :  { %529 = vmatpush1.bf16.msra.mxu0 %v1525_v1  ;;  %1501 = vmatpush1.bf16.msra.mxu1 %v1525_v1  ;;  %v1543_v6 = vld [vmem:[#allocation3 + $0x4] ss:$8 sps:$4 sm:$0xff]   ;;  %v1530_v7 = vld [vmem:[#allocation6 + $0x10] sm:$0xff]   ;;  %v1533_v11 = vld [vmem:[#allocation6 + $0x78] sm:$0xff]  }
  0x20   :  { %530 = vmatprep.subr.bf16.mxu0 %v1679_v0  ;;  %1486 = vmatprep.subr.bf16.mxu1 %v1679_v0  ;;  %v1546_v8 = vld [vmem:[#allocation3 + $0xb4] ss:$8 sps:$4 sm:$0xff]   ;;  %v1531_v9 = vld [vmem:[#allocation6 + $0x8] sm:$0xff]   ;;  %v1532_v10 = vld [vmem:[#allocation6] sm:$0xff]  }
  0x21   :  { %560 = vmatprep.mubr.bf16.mxu0 %v1543_v6  ;;  %648 = vmatprep.mubr.bf16.mxu1 %v1546_v8  ;;  %v1534_v12 = vld [vmem:[#allocation6 + $0x70] sm:$0xff]   ;;  %v1535_v13 = vld [vmem:[#allocation6 + $0x68] sm:$0xff]   ;;  %v1536_v14 = vld [vmem:[#allocation6 + $0x60] sm:$0xff]  }
  0x22   :  { %v1537_v15 = vld [vmem:[#allocation6 + $0x58] sm:$0xff]   ;;  %v1538_v16 = vld [vmem:[#allocation6 + $0x50] sm:$0xff]   ;;  %v1539_v17 = vld [vmem:[#allocation6 + $0x48] sm:$0xff]  }
  0x23   :  { %531 = vmatpush1.bf16.msra.mxu0 %v1526_v2  ;;  %1502 = vmatpush1.bf16.msra.mxu1 %v1526_v2  ;;  %v1540_v18 = vld [vmem:[#allocation6 + $0x40] sm:$0xff]   ;;  %v1544_v20 = vld [vmem:[#allocation3 + $0xb0] ss:$8 sps:$4 sm:$0xff]   ;;  %v1547_v21 = vld [vmem:[#allocation3 + $0x14] ss:$8 sps:$4 sm:$0xff]  }
  0x24   :  { %532 = vmatprep.subr.bf16.mxu0 %v1679_v0  ;;  %1487 = vmatprep.subr.bf16.mxu1 %v1679_v0  ;;  %v1541_v19 = vld [vmem:[#allocation3] ss:$8 sps:$4 sm:$0xff]   ;;  %v1549_v22 = vld [vmem:[#allocation3 + $0xc4] ss:$8 sps:$4 sm:$0xff]   ;;  %v1551_v23 = vld [vmem:[#allocation3 + $0x10] ss:$8 sps:$4 sm:$0xff]  }
  0x25   :  { %v1552_v24 = vld [vmem:[#allocation3 + $0xc0] ss:$8 sps:$4 sm:$0xff]   ;;  %v1553_v25 = vld [vmem:[#allocation3 + $0x24] ss:$8 sps:$4 sm:$0xff]   ;;  %v1555_v26 = vld [vmem:[#allocation3 + $0xd4] ss:$8 sps:$4 sm:$0xff]  }
  0x26   :  { %v1557_v27 = vld [vmem:[#allocation3 + $0x20] ss:$8 sps:$4 sm:$0xff]   ;;  %v1558_v28 = vld [vmem:[#allocation3 + $0xd0] ss:$8 sps:$4 sm:$0xff]   ;;  %v1559_v29 = vld [vmem:[#allocation3 + $0x34] ss:$8 sps:$4 sm:$0xff]  }
  0x27   :  { %533 = vmatpush1.bf16.msra.mxu0 %v1527_v3  ;;  %1503 = vmatpush1.bf16.msra.mxu1 %v1527_v3  ;;  %v1561_v30 = vld [vmem:[#allocation3 + $0xe4] ss:$8 sps:$4 sm:$0xff]   ;;  %v1563_v31 = vld [vmem:[#allocation3 + $0x30] ss:$8 sps:$4 sm:$0xff]   ;;  %v1564_v32 = vld [vmem:[#allocation3 + $0xe0] ss:$8 sps:$4 sm:$0xff]  }
  0x28   :  { %534 = vmatprep.subr.bf16.mxu0 %v1679_v0  ;;  %1488 = vmatprep.subr.bf16.mxu1 %v1679_v0  ;;  %v1565_v33 = vld [vmem:[#allocation3 + $0x44] ss:$8 sps:$4 sm:$0xff]   ;;  %v1567_v34 = vld [vmem:[#allocation3 + $0xf4] ss:$8 sps:$4 sm:$0xff]   ;;  %v1569_v35 = vld [vmem:[#allocation3 + $0x40] ss:$8 sps:$4 sm:$0xff]  }
  0x29   :  { %v1570_v36 = vld [vmem:[#allocation3 + $0xf0] ss:$8 sps:$4 sm:$0xff]   ;;  %v1571_v37 = vld [vmem:[#allocation3 + $0x54] ss:$8 sps:$4 sm:$0xff]   ;;  %v1573_v38 = vld [vmem:[#allocation3 + $0x104] ss:$8 sps:$4 sm:$0xff]  }
  0x2a   :  { %v1575_v39 = vld [vmem:[#allocation3 + $0x50] ss:$8 sps:$4 sm:$0xff]   ;;  %v1576_v40 = vld [vmem:[#allocation3 + $0x100] ss:$8 sps:$4 sm:$0xff]   ;;  %v1577_v41 = vld [vmem:[#allocation3 + $0x64] ss:$8 sps:$4 sm:$0xff]  }
  0x2b   :  { %535 = vmatpush1.bf16.msra.mxu0 %v1528_v4  ;;  %1504 = vmatpush1.bf16.msra.mxu1 %v1528_v4  ;;  %v1579_v42 = vld [vmem:[#allocation3 + $0x114] ss:$8 sps:$4 sm:$0xff]   ;;  %v1581_v43 = vld [vmem:[#allocation3 + $0x60] ss:$8 sps:$4 sm:$0xff]   ;;  %v1582_v44 = vld [vmem:[#allocation3 + $0x110] ss:$8 sps:$4 sm:$0xff]  }
  0x2c   :  { %536 = vmatprep.subr.bf16.mxu0 %v1679_v0  ;;  %1489 = vmatprep.subr.bf16.mxu1 %v1679_v0  ;;  %v1583_v45 = vld [vmem:[#allocation3 + $0x74] ss:$8 sps:$4 sm:$0xff]   ;;  %v1585_v46 = vld [vmem:[#allocation3 + $0x124] ss:$8 sps:$4 sm:$0xff]   ;;  %v1587_v47 = vld [vmem:[#allocation3 + $0x70] ss:$8 sps:$4 sm:$0xff]  }
  0x2d   :  { %v1588_v48 = vld [vmem:[#allocation3 + $0x120] ss:$8 sps:$4 sm:$0xff]   ;;  %v1589_v49 = vld [vmem:[#allocation3 + $0x84] ss:$8 sps:$4 sm:$0xff]   ;;  %v1591_v50 = vld [vmem:[#allocation3 + $0x134] ss:$8 sps:$4 sm:$0xff]  }
  0x2e   :  { %v1593_v51 = vld [vmem:[#allocation3 + $0x80] ss:$8 sps:$4 sm:$0xff]   ;;  %v1594_v52 = vld [vmem:[#allocation3 + $0x130] ss:$8 sps:$4 sm:$0xff]   ;;  %v1595_v53 = vld [vmem:[#allocation3 + $0x94] ss:$8 sps:$4 sm:$0xff]  }
  0x2f   :  { %537 = vmatpush1.bf16.msra.mxu0 %v1529_v5  ;;  %1505 = vmatpush1.bf16.msra.mxu1 %v1529_v5  ;;  %v1597_v54 = vld [vmem:[#allocation3 + $0x144] ss:$8 sps:$4 sm:$0xff]   ;;  %v1599_v55 = vld [vmem:[#allocation3 + $0x90] ss:$8 sps:$4 sm:$0xff]   ;;  %v1600_v56 = vld [vmem:[#allocation3 + $0x140] ss:$8 sps:$4 sm:$0xff]  }
  0x30   :  { %538 = vmatprep.subr.bf16.mxu0 %v1679_v0  ;;  %1490 = vmatprep.subr.bf16.mxu1 %v1679_v0  ;;  %v1601_v57 = vld [vmem:[#allocation3 + $0xa4] ss:$8 sps:$4 sm:$0xff]   ;;  %v1603_v58 = vld [vmem:[#allocation3 + $0x154] ss:$8 sps:$4 sm:$0xff]   ;;  %v1605_v59 = vld [vmem:[#allocation3 + $0xa0] ss:$8 sps:$4 sm:$0xff]  }
  0x31   :  { %v1606_v60 = vld [vmem:[#allocation3 + $0x150] ss:$8 sps:$4 sm:$0xff]   ;;  %v1745_v62 = vld [vmem:[%s1799_s2] ss:$0 sm:$0xff]  ;;  %s1680_s2 = smov [#allocation8]  }
  0x32   :  { %s1192_s26 = sshll.u32 %s1680_s2, 4  ;;  %s1193_s26 = int_to_ptr.vmem [resolvable:$true] %s1192_s26 }
  0x33   :  { %539 = vmatpush1.bf16.msra.mxu0 %v1530_v7  ;;  %1506 = vmatpush1.bf16.msra.mxu1 %v1530_v7  ;;  %s1647_s27 = scalar_lea.vmem %s1193_s26, 2816  ;;  %p1652_p11 = scmp.lt.s32.totalorder %s1193_s26, %s1193_s26 }
  0x34   :  { %540 = vmatprep.subr.bf16.mxu0 %v1679_v0  ;;  %1491 = vmatprep.subr.bf16.mxu1 %v1679_v0  ;;  %p1648_p10 = scmp.ne.s32.totalorder %s1193_s26, %s1647_s27  ;;  %p1653_p12 = scmp.lt.s32.totalorder %s1647_s27, %s1647_s27 }
  0x36   :  { %p1654_p13 = por %p1653_p12, %p1652_p11 }
  0x37   :  { %541 = vmatpush1.bf16.msra.mxu0 %v1531_v9  ;;  %1507 = vmatpush1.bf16.msra.mxu1 %v1531_v9 }
  0x38   :  { %542 = vmatprep.subr.bf16.mxu0 %v1679_v0  ;;  %1492 = vmatprep.subr.bf16.mxu1 %v1679_v0  ;;  %p1655_p0 = pnand %p1654_p13, %p1648_p10 }
  0x3b   :  { %543 = vmatpush1.bf16.msra.mxu0 %v1532_v10  ;;  %1508 = vmatpush1.bf16.msra.mxu1 %v1532_v10 }
  0x3c   :  { %544 = vmatprep.subr.bf16.mxu0 %v1679_v0  ;;  %1493 = vmatprep.subr.bf16.mxu1 %v1679_v0 }
  0x3f   :  { %545 = vmatpush2.bf16.msra.mxu0 %v1533_v11  ;;  %1509 = vmatpush2.bf16.msra.mxu1 %v1533_v11 }
  0x40   :  { %546 = vmatprep.subr.bf16.mxu0 %v1679_v0  ;;  %1494 = vmatprep.subr.bf16.mxu1 %v1679_v0 }
  0x43   :  { %547 = vmatpush2.bf16.msra.mxu0 %v1534_v12  ;;  %1510 = vmatpush2.bf16.msra.mxu1 %v1534_v12 }
  0x44   :  { %548 = vmatprep.subr.bf16.mxu0 %v1679_v0  ;;  %1495 = vmatprep.subr.bf16.mxu1 %v1679_v0 }
  0x47   :  { %549 = vmatpush2.bf16.msra.mxu0 %v1535_v13  ;;  %1511 = vmatpush2.bf16.msra.mxu1 %v1535_v13 }
  0x48   :  { %550 = vmatprep.subr.bf16.mxu0 %v1679_v0  ;;  %1496 = vmatprep.subr.bf16.mxu1 %v1679_v0 }
  0x4b   :  { %551 = vmatpush2.bf16.msra.mxu0 %v1536_v14  ;;  %1512 = vmatpush2.bf16.msra.mxu1 %v1536_v14 }
  0x4c   :  { %552 = vmatprep.subr.bf16.mxu0 %v1679_v0  ;;  %1497 = vmatprep.subr.bf16.mxu1 %v1679_v0 }
  0x4f   :  { %553 = vmatpush2.bf16.msra.mxu0 %v1537_v15  ;;  %1513 = vmatpush2.bf16.msra.mxu1 %v1537_v15 }
  0x50   :  { %554 = vmatprep.subr.bf16.mxu0 %v1679_v0  ;;  %1498 = vmatprep.subr.bf16.mxu1 %v1679_v0 }
  0x53   :  { %555 = vmatpush2.bf16.msra.mxu0 %v1538_v16  ;;  %1514 = vmatpush2.bf16.msra.mxu1 %v1538_v16 }
  0x54   :  { %556 = vmatprep.subr.bf16.mxu0 %v1679_v0  ;;  %1499 = vmatprep.subr.bf16.mxu1 %v1679_v0 }
  0x57   :  { %557 = vmatpush2.bf16.msra.mxu0 %v1539_v17  ;;  %1515 = vmatpush2.bf16.msra.mxu1 %v1539_v17 }
  0x58   :  { %558 = vmatprep.subr.bf16.mxu0 %v1679_v0  ;;  %1500 = vmatprep.subr.bf16.mxu1 %v1679_v0 }
  0x5b   :  { %559 = vmatpush2.bf16.msra.mxu0 %v1540_v18  ;;  %1516 = vmatpush2.bf16.msra.mxu1 %v1540_v18 }
  0x5e   :  { %561 = vmatmul.mubr.bf16.vlgmr.msra.gmra.mxu0 %v1541_v19  ;;  %649 = vmatmul.mubr.bf16.vlgmr.msra.gmra.mxu1 %v1544_v20 }
  0x5f   :  { %568 = vmatprep.mubr.bf16.mxu0 %v1547_v21  ;;  %656 = vmatprep.mubr.bf16.mxu1 %v1549_v22 }
  0x66   :  { %569 = vmatmul.mubr.bf16.gmra.mxu0 %v1551_v23  ;;  %657 = vmatmul.mubr.bf16.gmra.mxu1 %v1552_v24 }
  0x67   :  { %576 = vmatprep.mubr.bf16.mxu0 %v1553_v25  ;;  %664 = vmatprep.mubr.bf16.mxu1 %v1555_v26 }
  0x6e   :  { %577 = vmatmul.mubr.bf16.gmra.mxu0 %v1557_v27  ;;  %665 = vmatmul.mubr.bf16.gmra.mxu1 %v1558_v28 }
  0x6f   :  { %584 = vmatprep.mubr.bf16.mxu0 %v1559_v29  ;;  %672 = vmatprep.mubr.bf16.mxu1 %v1561_v30 }
  0x76   :  { %585 = vmatmul.mubr.bf16.gmra.mxu0 %v1563_v31  ;;  %673 = vmatmul.mubr.bf16.gmra.mxu1 %v1564_v32 }
  0x77   :  { %592 = vmatprep.mubr.bf16.mxu0 %v1565_v33  ;;  %680 = vmatprep.mubr.bf16.mxu1 %v1567_v34 }
  0x7e   :  { %593 = vmatmul.mubr.bf16.gmra.mxu0 %v1569_v35  ;;  %681 = vmatmul.mubr.bf16.gmra.mxu1 %v1570_v36 }
  0x7f   :  { %600 = vmatprep.mubr.bf16.mxu0 %v1571_v37  ;;  %688 = vmatprep.mubr.bf16.mxu1 %v1573_v38 }
  0x86   :  { %601 = vmatmul.mubr.bf16.gmra.mxu0 %v1575_v39  ;;  %689 = vmatmul.mubr.bf16.gmra.mxu1 %v1576_v40 }
  0x87   :  { %608 = vmatprep.mubr.bf16.mxu0 %v1577_v41  ;;  %696 = vmatprep.mubr.bf16.mxu1 %v1579_v42 }
  0x8e   :  { %609 = vmatmul.mubr.bf16.gmra.mxu0 %v1581_v43  ;;  %697 = vmatmul.mubr.bf16.gmra.mxu1 %v1582_v44 }
  0x8f   :  { %616 = vmatprep.mubr.bf16.mxu0 %v1583_v45  ;;  %704 = vmatprep.mubr.bf16.mxu1 %v1585_v46 }
  0x96   :  { %617 = vmatmul.mubr.bf16.gmra.mxu0 %v1587_v47  ;;  %705 = vmatmul.mubr.bf16.gmra.mxu1 %v1588_v48 }
  0x97   :  { %624 = vmatprep.mubr.bf16.mxu0 %v1589_v49  ;;  %712 = vmatprep.mubr.bf16.mxu1 %v1591_v50 }
  0x9e   :  { %625 = vmatmul.mubr.bf16.gmra.mxu0 %v1593_v51  ;;  %713 = vmatmul.mubr.bf16.gmra.mxu1 %v1594_v52 }
  0x9f   :  { %632 = vmatprep.mubr.bf16.mxu0 %v1595_v53  ;;  %720 = vmatprep.mubr.bf16.mxu1 %v1597_v54 }
  0xa6   :  { %633 = vmatmul.mubr.bf16.gmra.mxu0 %v1599_v55  ;;  %721 = vmatmul.mubr.bf16.gmra.mxu1 %v1600_v56 }
  0xa7   :  { %640 = vmatprep.mubr.bf16.mxu0 %v1601_v57  ;;  %728 = vmatprep.mubr.bf16.mxu1 %v1603_v58 }
  0xae   :  { %641 = vmatmul.mubr.bf16.gmra.mxu0 %v1605_v59  ;;  %729 = vmatmul.mubr.bf16.gmra.mxu1 %v1606_v60 }
 0x11e   :  { %v562_v61 = vpop.f32.mrf.mxu0  ;;  %v650_v63 = vpop.f32.mrf.mxu1 }
 0x11f   :  { %v879_v2 = vadd.f32 %v1745_v62, %v562_v61  ;;  %v901_v3 = vadd.f32 %v1745_v62, %v650_v63 }
 0x120   :  { %v564_v0 = vpop.f32.mrf.mxu0  ;;  %v652_v1 = vpop.f32.mrf.mxu1 }
 0x121   :  { %v923_v10 = vmax.f32 %v879_v2, 0.0  ;;  %v945_v11 = vmax.f32 %v901_v3, 0.0 }
 0x122   :  { %v565_v4 = vpop.f32.mrf.mxu0  ;;  %v653_v5 = vpop.f32.mrf.mxu1 }
 0x123   :  { %v880_v6 = vadd.f32 %v1745_v62, %v565_v4  ;;  %v902_v7 = vadd.f32 %v1745_v62, %v653_v5 }
 0x124   :  { %v567_v8 = vpop.f32.mrf.mxu0  ;;  %v655_v9 = vpop.f32.mrf.mxu1 }
 0x125   :  { %v924_v12 = vmax.f32 %v880_v6, 0.0  ;;  %v946_v13 = vmax.f32 %v902_v7, 0.0 }
 0x126   :  { %v570_v14 = vpop.f32.mrf.mxu0  ;;  %v658_v15 = vpop.f32.mrf.mxu1 }
 0x127   :  { %v1357_v16 = vpack.c.bf16 %v924_v12, %v923_v10  ;;  %v1412_v17 = vpack.c.bf16 %v946_v13, %v945_v11  ;;  %v881_v20 = vadd.f32 %v1745_v62, %v570_v14  ;;  %v903_v21 = vadd.f32 %v1745_v62, %v658_v15 }
 0x128   :  { %v572_v18 = vpop.f32.mrf.mxu0  ;;  %v660_v19 = vpop.f32.mrf.mxu1 }
 0x129   :  { %1358 = vst [vmem:[#allocation8] sm:$0xff] %v1357_v16   ;;  %1474 = vst [vmem:[#allocation8 + $0x58] sm:$0xff] %v1412_v17   ;;  %v925_v28 = vmax.f32 %v881_v20, 0.0  ;;  %v947_v29 = vmax.f32 %v903_v21, 0.0 }
 0x12a   :  { %v573_v22 = vpop.f32.mrf.mxu0  ;;  %v661_v23 = vpop.f32.mrf.mxu1 }
 0x12b   :  { %v882_v24 = vadd.f32 %v1745_v62, %v573_v22  ;;  %v904_v25 = vadd.f32 %v1745_v62, %v661_v23 }
 0x12c   :  { %v575_v26 = vpop.f32.mrf.mxu0  ;;  %v663_v27 = vpop.f32.mrf.mxu1 }
 0x12d   :  { %v926_v30 = vmax.f32 %v882_v24, 0.0  ;;  %v948_v31 = vmax.f32 %v904_v25, 0.0 }
 0x12e   :  { %v578_v32 = vpop.f32.mrf.mxu0  ;;  %v666_v33 = vpop.f32.mrf.mxu1 }
 0x12f   :  { %v1362_v34 = vpack.c.bf16 %v926_v30, %v925_v28  ;;  %v1417_v35 = vpack.c.bf16 %v948_v31, %v947_v29  ;;  %v883_v38 = vadd.f32 %v1745_v62, %v578_v32  ;;  %v905_v39 = vadd.f32 %v1745_v62, %v666_v33 }
 0x130   :  { %v580_v36 = vpop.f32.mrf.mxu0  ;;  %v668_v37 = vpop.f32.mrf.mxu1 }
 0x131   :  { %1464 = vst [vmem:[#allocation8 + $0x8] sm:$0xff] %v1362_v34   ;;  %1475 = vst [vmem:[#allocation8 + $0x60] sm:$0xff] %v1417_v35   ;;  %v927_v46 = vmax.f32 %v883_v38, 0.0  ;;  %v949_v47 = vmax.f32 %v905_v39, 0.0 }
 0x132   :  { %v581_v40 = vpop.f32.mrf.mxu0  ;;  %v669_v41 = vpop.f32.mrf.mxu1 }
 0x133   :  { %v884_v42 = vadd.f32 %v1745_v62, %v581_v40  ;;  %v906_v43 = vadd.f32 %v1745_v62, %v669_v41 }
 0x134   :  { %v583_v44 = vpop.f32.mrf.mxu0  ;;  %v671_v45 = vpop.f32.mrf.mxu1 }
 0x135   :  { %v928_v48 = vmax.f32 %v884_v42, 0.0  ;;  %v950_v49 = vmax.f32 %v906_v43, 0.0 }
 0x136   :  { %v586_v50 = vpop.f32.mrf.mxu0  ;;  %v674_v51 = vpop.f32.mrf.mxu1 }
 0x137   :  { %v1367_v52 = vpack.c.bf16 %v928_v48, %v927_v46  ;;  %v1422_v53 = vpack.c.bf16 %v950_v49, %v949_v47  ;;  %v885_v56 = vadd.f32 %v1745_v62, %v586_v50  ;;  %v907_v57 = vadd.f32 %v1745_v62, %v674_v51 }
 0x138   :  { %v588_v54 = vpop.f32.mrf.mxu0  ;;  %v676_v55 = vpop.f32.mrf.mxu1 }
 0x139   :  { %1465 = vst [vmem:[#allocation8 + $0x10] sm:$0xff] %v1367_v52   ;;  %1476 = vst [vmem:[#allocation8 + $0x68] sm:$0xff] %v1422_v53   ;;  %v929_v1 = vmax.f32 %v885_v56, 0.0  ;;  %v951_v2 = vmax.f32 %v907_v57, 0.0 }
 0x13a   :  { %v589_v58 = vpop.f32.mrf.mxu0  ;;  %v677_v59 = vpop.f32.mrf.mxu1 }
 0x13b   :  { %v886_v60 = vadd.f32 %v1745_v62, %v589_v58  ;;  %v908_v61 = vadd.f32 %v1745_v62, %v677_v59 }
 0x13c   :  { %v591_v63 = vpop.f32.mrf.mxu0  ;;  %v679_v0 = vpop.f32.mrf.mxu1 }
 0x13d   :  { %v930_v3 = vmax.f32 %v886_v60, 0.0  ;;  %v952_v4 = vmax.f32 %v908_v61, 0.0 }
 0x13e   :  { %v594_v5 = vpop.f32.mrf.mxu0  ;;  %v682_v6 = vpop.f32.mrf.mxu1 }
 0x13f   :  { %v1372_v7 = vpack.c.bf16 %v930_v3, %v929_v1  ;;  %v1427_v8 = vpack.c.bf16 %v952_v4, %v951_v2  ;;  %v887_v11 = vadd.f32 %v1745_v62, %v594_v5  ;;  %v909_v12 = vadd.f32 %v1745_v62, %v682_v6 }
 0x140   :  { %v596_v9 = vpop.f32.mrf.mxu0  ;;  %v684_v10 = vpop.f32.mrf.mxu1 }
 0x141   :  { %1466 = vst [vmem:[#allocation8 + $0x18] sm:$0xff] %v1372_v7   ;;  %1477 = vst [vmem:[#allocation8 + $0x70] sm:$0xff] %v1427_v8   ;;  %v931_v19 = vmax.f32 %v887_v11, 0.0  ;;  %v953_v20 = vmax.f32 %v909_v12, 0.0 }
 0x142   :  { %v597_v13 = vpop.f32.mrf.mxu0  ;;  %v685_v14 = vpop.f32.mrf.mxu1 }
 0x143   :  { %v888_v15 = vadd.f32 %v1745_v62, %v597_v13  ;;  %v910_v16 = vadd.f32 %v1745_v62, %v685_v14 }
 0x144   :  { %v599_v17 = vpop.f32.mrf.mxu0  ;;  %v687_v18 = vpop.f32.mrf.mxu1 }
 0x145   :  { %v932_v21 = vmax.f32 %v888_v15, 0.0  ;;  %v954_v22 = vmax.f32 %v910_v16, 0.0 }
 0x146   :  { %v602_v23 = vpop.f32.mrf.mxu0  ;;  %v690_v24 = vpop.f32.mrf.mxu1 }
 0x147   :  { %v1377_v25 = vpack.c.bf16 %v932_v21, %v931_v19  ;;  %v1432_v26 = vpack.c.bf16 %v954_v22, %v953_v20  ;;  %v889_v29 = vadd.f32 %v1745_v62, %v602_v23  ;;  %v911_v30 = vadd.f32 %v1745_v62, %v690_v24 }
 0x148   :  { %v604_v27 = vpop.f32.mrf.mxu0  ;;  %v692_v28 = vpop.f32.mrf.mxu1 }
 0x149   :  { %1467 = vst [vmem:[#allocation8 + $0x20] sm:$0xff] %v1377_v25   ;;  %1478 = vst [vmem:[#allocation8 + $0x78] sm:$0xff] %v1432_v26   ;;  %v933_v37 = vmax.f32 %v889_v29, 0.0  ;;  %v955_v38 = vmax.f32 %v911_v30, 0.0 }
 0x14a   :  { %v605_v31 = vpop.f32.mrf.mxu0  ;;  %v693_v32 = vpop.f32.mrf.mxu1 }
 0x14b   :  { %v890_v33 = vadd.f32 %v1745_v62, %v605_v31  ;;  %v912_v34 = vadd.f32 %v1745_v62, %v693_v32 }
 0x14c   :  { %v607_v35 = vpop.f32.mrf.mxu0  ;;  %v695_v36 = vpop.f32.mrf.mxu1 }
 0x14d   :  { %v934_v39 = vmax.f32 %v890_v33, 0.0  ;;  %v956_v40 = vmax.f32 %v912_v34, 0.0 }
 0x14e   :  { %v610_v41 = vpop.f32.mrf.mxu0  ;;  %v698_v42 = vpop.f32.mrf.mxu1 }
 0x14f   :  { %v1382_v43 = vpack.c.bf16 %v934_v39, %v933_v37  ;;  %v1437_v44 = vpack.c.bf16 %v956_v40, %v955_v38  ;;  %v891_v47 = vadd.f32 %v1745_v62, %v610_v41  ;;  %v913_v48 = vadd.f32 %v1745_v62, %v698_v42 }
 0x150   :  { %v612_v45 = vpop.f32.mrf.mxu0  ;;  %v700_v46 = vpop.f32.mrf.mxu1 }
 0x151   :  { %1468 = vst [vmem:[#allocation8 + $0x28] sm:$0xff] %v1382_v43   ;;  %1479 = vst [vmem:[#allocation8 + $0x80] sm:$0xff] %v1437_v44   ;;  %v935_v55 = vmax.f32 %v891_v47, 0.0  ;;  %v957_v56 = vmax.f32 %v913_v48, 0.0 }
 0x152   :  { %v613_v49 = vpop.f32.mrf.mxu0  ;;  %v701_v50 = vpop.f32.mrf.mxu1 }
 0x153   :  { %v892_v51 = vadd.f32 %v1745_v62, %v613_v49  ;;  %v914_v52 = vadd.f32 %v1745_v62, %v701_v50 }
 0x154   :  { %v615_v53 = vpop.f32.mrf.mxu0  ;;  %v703_v54 = vpop.f32.mrf.mxu1 }
 0x155   :  { %v936_v57 = vmax.f32 %v892_v51, 0.0  ;;  %v958_v58 = vmax.f32 %v914_v52, 0.0 }
 0x156   :  { %v618_v59 = vpop.f32.mrf.mxu0  ;;  %v706_v60 = vpop.f32.mrf.mxu1 }
 0x157   :  { %v1387_v61 = vpack.c.bf16 %v936_v57, %v935_v55  ;;  %v1442_v63 = vpack.c.bf16 %v958_v58, %v957_v56  ;;  %v893_v2 = vadd.f32 %v1745_v62, %v618_v59  ;;  %v915_v3 = vadd.f32 %v1745_v62, %v706_v60 }
 0x158   :  { %v620_v0 = vpop.f32.mrf.mxu0  ;;  %v708_v1 = vpop.f32.mrf.mxu1 }
 0x159   :  { %1469 = vst [vmem:[#allocation8 + $0x30] sm:$0xff] %v1387_v61   ;;  %1480 = vst [vmem:[#allocation8 + $0x88] sm:$0xff] %v1442_v63   ;;  %v937_v10 = vmax.f32 %v893_v2, 0.0  ;;  %v959_v11 = vmax.f32 %v915_v3, 0.0 }
 0x15a   :  { %v621_v4 = vpop.f32.mrf.mxu0  ;;  %v709_v5 = vpop.f32.mrf.mxu1 }
 0x15b   :  { %v894_v6 = vadd.f32 %v1745_v62, %v621_v4  ;;  %v916_v7 = vadd.f32 %v1745_v62, %v709_v5 }
 0x15c   :  { %v623_v8 = vpop.f32.mrf.mxu0  ;;  %v711_v9 = vpop.f32.mrf.mxu1 }
 0x15d   :  { %v938_v12 = vmax.f32 %v894_v6, 0.0  ;;  %v960_v13 = vmax.f32 %v916_v7, 0.0 }
 0x15e   :  { %v626_v14 = vpop.f32.mrf.mxu0  ;;  %v714_v15 = vpop.f32.mrf.mxu1 }
 0x15f   :  { %v1392_v16 = vpack.c.bf16 %v938_v12, %v937_v10  ;;  %v1447_v17 = vpack.c.bf16 %v960_v13, %v959_v11  ;;  %v895_v20 = vadd.f32 %v1745_v62, %v626_v14  ;;  %v917_v21 = vadd.f32 %v1745_v62, %v714_v15 }
 0x160   :  { %v628_v18 = vpop.f32.mrf.mxu0  ;;  %v716_v19 = vpop.f32.mrf.mxu1 }
 0x161   :  { %1470 = vst [vmem:[#allocation8 + $0x38] sm:$0xff] %v1392_v16   ;;  %1481 = vst [vmem:[#allocation8 + $0x90] sm:$0xff] %v1447_v17   ;;  %v939_v28 = vmax.f32 %v895_v20, 0.0  ;;  %v961_v29 = vmax.f32 %v917_v21, 0.0 }
 0x162   :  { %v629_v22 = vpop.f32.mrf.mxu0  ;;  %v717_v23 = vpop.f32.mrf.mxu1 }
 0x163   :  { %v896_v24 = vadd.f32 %v1745_v62, %v629_v22  ;;  %v918_v25 = vadd.f32 %v1745_v62, %v717_v23 }
 0x164   :  { %v631_v26 = vpop.f32.mrf.mxu0  ;;  %v719_v27 = vpop.f32.mrf.mxu1 }
 0x165   :  { %v940_v30 = vmax.f32 %v896_v24, 0.0  ;;  %v962_v31 = vmax.f32 %v918_v25, 0.0 }
 0x166   :  { %v634_v32 = vpop.f32.mrf.mxu0  ;;  %v722_v33 = vpop.f32.mrf.mxu1 }
 0x167   :  { %v1397_v34 = vpack.c.bf16 %v940_v30, %v939_v28  ;;  %v1452_v35 = vpack.c.bf16 %v962_v31, %v961_v29  ;;  %v897_v38 = vadd.f32 %v1745_v62, %v634_v32  ;;  %v919_v39 = vadd.f32 %v1745_v62, %v722_v33 }
 0x168   :  { %v636_v36 = vpop.f32.mrf.mxu0  ;;  %v724_v37 = vpop.f32.mrf.mxu1 }
 0x169   :  { %1471 = vst [vmem:[#allocation8 + $0x40] sm:$0xff] %v1397_v34   ;;  %1482 = vst [vmem:[#allocation8 + $0x98] sm:$0xff] %v1452_v35   ;;  %v941_v46 = vmax.f32 %v897_v38, 0.0  ;;  %v963_v47 = vmax.f32 %v919_v39, 0.0 }
 0x16a   :  { %v637_v40 = vpop.f32.mrf.mxu0  ;;  %v725_v41 = vpop.f32.mrf.mxu1 }
 0x16b   :  { %v898_v42 = vadd.f32 %v1745_v62, %v637_v40  ;;  %v920_v43 = vadd.f32 %v1745_v62, %v725_v41 }
 0x16c   :  { %v639_v44 = vpop.f32.mrf.mxu0  ;;  %v727_v45 = vpop.f32.mrf.mxu1 }
 0x16d   :  { %v942_v48 = vmax.f32 %v898_v42, 0.0  ;;  %v964_v49 = vmax.f32 %v920_v43, 0.0 }
 0x16e   :  { %v642_v50 = vpop.f32.mrf.mxu0  ;;  %v730_v51 = vpop.f32.mrf.mxu1 }
 0x16f   :  { %v1402_v52 = vpack.c.bf16 %v942_v48, %v941_v46  ;;  %v1457_v53 = vpack.c.bf16 %v964_v49, %v963_v47  ;;  %v899_v56 = vadd.f32 %v1745_v62, %v642_v50  ;;  %v921_v57 = vadd.f32 %v1745_v62, %v730_v51 }
 0x170   :  { %v644_v54 = vpop.f32.mrf.mxu0  ;;  %v732_v55 = vpop.f32.mrf.mxu1 }
 0x171   :  { %1472 = vst [vmem:[#allocation8 + $0x48] sm:$0xff] %v1402_v52   ;;  %1483 = vst [vmem:[#allocation8 + $0xa0] sm:$0xff] %v1457_v53   ;;  %v943_v1 = vmax.f32 %v899_v56, 0.0  ;;  %v965_v2 = vmax.f32 %v921_v57, 0.0 }
 0x172   :  { %v645_v58 = vpop.f32.mrf.mxu0  ;;  %v733_v59 = vpop.f32.mrf.mxu1 }
 0x173   :  { %v900_v60 = vadd.f32 %v1745_v62, %v645_v58  ;;  %v922_v61 = vadd.f32 %v1745_v62, %v733_v59 }
 0x174   :  { %v647_v63 = vpop.f32.mrf.mxu0  ;;  %v735_v0 = vpop.f32.mrf.mxu1 }
 0x175   :  { %v944_v3 = vmax.f32 %v900_v60, 0.0  ;;  %v966_v4 = vmax.f32 %v922_v61, 0.0 }
 0x177   :  { %v1407_v5 = vpack.c.bf16 %v944_v3, %v943_v1  ;;  %v1462_v6 = vpack.c.bf16 %v966_v4, %v965_v2 }
 0x179   :  { %1473 = vst [vmem:[#allocation8 + $0x50] sm:$0xff] %v1407_v5   ;;  %1484 = vst [vmem:[#allocation8 + $0xa8] sm:$0xff] %v1462_v6  }
 0x17a   :  { %1658 = shalt.err (!%p1655_p0)
}
 0x17b   :  { %1198 = dma.vmem_to_hbm [thread:$0]  %s1193_s26, 2816, %s1800_s3, [#allocation5], %s1677_s22, %s1677_s22, %s1678_s23  }
 0x17c   :  { %1671 = dma.done.wait [#allocation5], 2816  }
 0x17d   :  { %1672 = vsyncadd [#allocation5], 4294964480 }
 0x17e   :  { %1202 = vsyncpa [#allocation4], 1 }
 0x17f   :  { %1203 = vsyncpa [#allocation7], 1 }
 0x180   :  { %1204 = vsyncpa [#allocation5], 1 }

</bundles_post_ra>
